<compile_context>
chip_gen: v7x
topology: tpu7x:2x2x1
jax: 0.10.0
libtpu: 0.0.40
codegen_flags: <defaults>
</compile_context>

<pallas_src>
import jax
import jax.numpy as jnp
from jax.experimental import pallas as pl
from jax.experimental.pallas import tpu as pltpu

BN_EPS = 1e-5        # PyTorch BatchNorm1d default eps
LANE = 128           # vreg lane width        -> pad feature dims to this
BATCH_ALIGN = 16     # bf16-native sublane tile -> pad batch to this
PARAM_ROWS = 8       # rows of the packed per-feature parameter array


def _round_up(n, m):
    return (n + m - 1) // m * m


def generator_kernel(x_ref, w1_ref, w23_ref, w4_ref, p_ref, out_ref, xpad_ref):
    """Full forward pass in one invocation (all operands VMEM-resident).

    x_ref : (B, F) f32 at its true shape.
    w1_ref: (f_pad, h_pad) bf16;  w23_ref: (2, h_pad, h_pad) bf16;  w4_ref: (h_pad, c_pad) bf16.
    p_ref : (8, max(h_pad, c_pad)) f32 — rows 0..5 = gamma1,beta1,gamma2,beta2,gamma3,beta3,
            row 6 = final-layer bias.  (BN-layer Linear biases cancel under BN -> omitted.)
    xpad_ref: (b_pad, f_pad) f32 scratch used to zero-pad + stage the input.
    """
    B, F = x_ref.shape
    b_pad, f_pad = xpad_ref.shape
    h_pad = w1_ref.shape[1]
    c_pad = w4_ref.shape[1]
    inv_b = 1.0 / float(B)

    # ---- Pad + cast the input inside the kernel (padding rows/cols are exactly zero). ----
    if (B, F) == (b_pad, f_pad):
        x_f32 = x_ref[...]
    else:
        xpad_ref[...] = jnp.zeros_like(xpad_ref)
        xpad_ref[0:B, 0:F] = x_ref[...]
        x_f32 = xpad_ref[...]

    need_mask = b_pad != B
    valid = None
    if need_mask:
        row_ids = jax.lax.broadcasted_iota(jnp.int32, (b_pad, 1), 0)
        valid = (row_ids < B).astype(jnp.float32)

    def linear_bn_relu(h_bf16, w, gamma, beta):
        # Linear with NO bias: the bias cancels exactly under the BN mean subtraction.
        z = jnp.dot(h_bf16, w, preferred_element_type=jnp.float32)
        # One-pass biased (1/B) batch statistics.  Padded rows of z are exactly zero, so they
        # contribute nothing to the sums — no per-row masking of z needed.
        # (For much larger batches these axis-0 sums could move to the idle MXU via a
        #  ones-row matmul; at this size the two XLU reductions are not the bottleneck.)
        s1 = jnp.sum(z, axis=0, keepdims=True)
        s2 = jnp.sum(z * z, axis=0, keepdims=True)
        mean = s1 * inv_b
        var = s2 * inv_b - mean * mean
        scale = gamma * jax.lax.rsqrt(var + BN_EPS)        # gamma / sqrt(var + eps)
        shift = beta - mean * scale                        # beta  - mean * scale
        h = jnp.maximum(z * scale + shift, 0.0)            # folded BN + ReLU
        if need_mask:
            h = h * valid                                  # re-zero padding rows (shift != 0 there)
        return h.astype(jnp.bfloat16)

    h = x_f32.astype(jnp.bfloat16)
    h = linear_bn_relu(h, w1_ref[...], p_ref[0:1, :h_pad], p_ref[1:2, :h_pad])
    h = linear_bn_relu(h, w23_ref[0],  p_ref[2:3, :h_pad], p_ref[3:4, :h_pad])
    h = linear_bn_relu(h, w23_ref[1],  p_ref[4:5, :h_pad], p_ref[5:6, :h_pad])

    # Final Linear (keeps its bias, no activation).
    out_ref[...] = (jnp.dot(h, w4_ref[...], preferred_element_type=jnp.float32)
                    + p_ref[6:7, :c_pad]).astype(out_ref.dtype)


def _vmem_limit_bytes(bytes_needed):
    """Chip-aware VMEM scoped limit with ~25% headroom for compiler-internal scratch."""
    try:
        cap = int(pltpu.get_tpu_info().vmem_capacity_bytes)
    except Exception:
        cap = 64 * 1024 * 1024          # conservative fallback = v7x per-TensorCore VMEM
    # ~96 MiB on v5e/v6e (128 MiB parts), 48 MiB on v7x (64 MiB part).
    return int(min(cap * 3 // 4, max(32 * 1024 * 1024, 2 * bytes_needed)))


def generator_forward(x, packed_params, data_dim):
    """x: [B, latent_dim] f32.  packed_params = (w1_p, w23_p, w4_p, p) from pack_params."""
    w1_p, w23_p, w4_p, p_p = packed_params
    B, F = x.shape
    f_pad, h_pad = w1_p.shape
    c_pad = w4_p.shape[1]
    b_pad = _round_up(B, BATCH_ALIGN)
    assert f_pad >= F and c_pad >= data_dim

    param_bytes = sum(int(p.size) * p.dtype.itemsize for p in packed_params)
    io_bytes = int(x.size) * 4 + b_pad * c_pad * 4
    flops = 2 * b_pad * (f_pad * h_pad + 2 * h_pad * h_pad + h_pad * c_pad)
    cost = pl.CostEstimate(flops=flops, transcendentals=3 * h_pad,
                           bytes_accessed=param_bytes + io_bytes)

    # Whole-batch-resident budget: operands + a handful of f32 activation slabs + scratch.
    act_bytes = b_pad * max(h_pad, c_pad) * 4 * 6 + b_pad * f_pad * 4
    vmem_limit = _vmem_limit_bytes(param_bytes + io_bytes + act_bytes)

    out = pl.pallas_call(
        generator_kernel,
        out_shape=jax.ShapeDtypeStruct((b_pad, c_pad), jnp.float32),
        in_specs=[pl.BlockSpec(memory_space=pltpu.VMEM)] * 5,
        out_specs=pl.BlockSpec(memory_space=pltpu.VMEM),
        scratch_shapes=[pltpu.VMEM((b_pad, f_pad), jnp.float32)],
        compiler_params=pltpu.CompilerParams(vmem_limit_bytes=vmem_limit),
        cost_estimate=cost,
    )(x, w1_p, w23_p, w4_p, p_p)
    return out[:B, :data_dim]


# ----------------------------- parameter construction -----------------------------

def init_raw_params(key, latent_dim, model_dim, data_dim):
    """DCGAN-style init (W ~ N(0, 0.02)); nonzero biases / BN affine params so the kernel's
    bias-cancellation and BN folding are actually exercised against the reference."""
    dims = [(latent_dim, model_dim), (model_dim, model_dim),
            (model_dim, model_dim), (model_dim, data_dim)]
    ks = jax.random.split(key, 16)
    layers = []
    for i, (fi, fo) in enumerate(dims):
        kw, kb, kg, kbe = ks[4 * i:4 * i + 4]
        w = 0.02 * jax.random.normal(kw, (fi, fo), jnp.float32)
        b = 0.02 * jax.random.normal(kb, (fo,), jnp.float32)
        if i < 3:
            gamma = 1.0 + 0.02 * jax.random.normal(kg, (fo,), jnp.float32)
            beta = 0.02 * jax.random.normal(kbe, (fo,), jnp.float32)
            layers.append((w, b, gamma, beta))
        else:
            layers.append((w, b))
    return layers


def pack_params(layers):
    """Pad feature dims to 128 lanes, cast weights to bf16, stack w2/w3, and pack every
    per-feature vector the kernel needs (gamma/beta x3, final bias) into ONE (8, max_pad)
    f32 array.  BN-layer Linear biases are dropped — they cancel exactly inside BatchNorm."""
    (w1, _b1, g1, be1), (w2, _b2, g2, be2), (w3, _b3, g3, be3), (w4, b4) = layers
    f, h = w1.shape
    c = w4.shape[1]
    f_pad, h_pad, c_pad = _round_up(f, LANE), _round_up(h, LANE), _round_up(c, LANE)

    def pad_w(w, rows, cols):
        return (jnp.zeros((rows, cols), jnp.bfloat16)
                .at[:w.shape[0], :w.shape[1]].set(w.astype(jnp.bfloat16)))

    w1_p = pad_w(w1, f_pad, h_pad)
    w23_p = jnp.stack([pad_w(w2, h_pad, h_pad), pad_w(w3, h_pad, h_pad)])
    w4_p = pad_w(w4, h_pad, c_pad)

    p = jnp.zeros((PARAM_ROWS, max(h_pad, c_pad)), jnp.float32)
    p = p.at[0, :h].set(g1).at[1, :h].set(be1)
    p = p.at[2, :h].set(g2).at[3, :h].set(be2)
    p = p.at[4, :h].set(g3).at[5, :h].set(be3)
    p = p.at[6, :c].set(b4)
    return (w1_p, w23_p, w4_p, p)


def reference_forward(x, layers):
    """Pure-JAX reference with full PyTorch semantics (biases included in every Linear,
    train-mode biased BatchNorm stats); matmul inputs in bf16 to match kernel numerics."""
    h = x
    for layer in layers:
        w, b = layer[0], layer[1]
        z = jnp.dot(h.astype(jnp.bfloat16), w.astype(jnp.bfloat16),
                    preferred_element_type=jnp.float32) + b
        if len(layer) == 4:
            gamma, beta = layer[2], layer[3]
            mean = jnp.mean(z, axis=0, keepdims=True)
            var = jnp.mean((z - mean) ** 2, axis=0, keepdims=True)
            h = jnp.maximum((z - mean) * jax.lax.rsqrt(var + BN_EPS) * gamma + beta, 0.0)
        else:
            return z
    return h


if __name__ == "__main__":
    B, LATENT_DIM, MODEL_DIM, DATA_DIM = 8, 16, 32, 24

    key = jax.random.PRNGKey(0)
    kx, kp = jax.random.split(key)
    x = jax.random.normal(kx, (B, LATENT_DIM), jnp.float32)

    raw = init_raw_params(kp, LATENT_DIM, MODEL_DIM, DATA_DIM)
    packed = pack_params(raw)

    fwd = jax.jit(generator_forward, static_argnames=("data_dim",))
    out = fwd(x, packed, data_dim=DATA_DIM)
    jax.block_until_ready(out)

    assert out.shape == (B, DATA_DIM)
    ref = reference_forward(x, raw)
    assert jnp.all(jnp.isfinite(out))
    max_err = float(jnp.max(jnp.abs(out - ref)))
    assert jnp.allclose(out, ref, atol=1e-2, rtol=1e-2), max_err
    print("KERNEL_OK")
</pallas_src>

<mosaic_0001>
module attributes {stable_mosaic.version = 11 : i64} {
  func.func @generator_kernel(%arg0: memref<8x16xf32, #tpu.memory_space<vmem>>, %arg1: memref<128x128xbf16, #tpu.memory_space<vmem>>, %arg2: memref<2x128x128xbf16, #tpu.memory_space<vmem>>, %arg3: memref<128x128xbf16, #tpu.memory_space<vmem>>, %arg4: memref<8x128xf32, #tpu.memory_space<vmem>>, %arg5: memref<16x128xf32, #tpu.memory_space<vmem>>, %arg6: memref<16x128xf32, #tpu.memory_space<vmem>>) attributes {dimension_semantics = [], scalar_prefetch = 0 : i64, scratch_operands = 1 : i64, tpu.core_type = #tpu.core_type<tc>} {
    %cst = arith.constant 0.000000e+00 : f32
    %0 = vector.broadcast %cst : f32 to vector<16x128xf32>
    %c0 = arith.constant 0 : index
    %c0_0 = arith.constant 0 : index
    %1 = vector.load %arg6[%c0, %c0_0] : memref<16x128xf32, #tpu.memory_space<vmem>>, vector<16x128xf32>
    tpu.vector_store %arg6[%c0, %c0_0], %0 {strides = array<i32>} : memref<16x128xf32, #tpu.memory_space<vmem>>, vector<16x128xf32>,
    %c0_1 = arith.constant 0 : index
    %c0_2 = arith.constant 0 : index
    %2 = vector.load %arg0[%c0_1, %c0_2] : memref<8x16xf32, #tpu.memory_space<vmem>>, vector<8x16xf32>
    %c0_3 = arith.constant 0 : index
    %c0_4 = arith.constant 0 : index
    %3 = vector.load %arg6[%c0_3, %c0_4] : memref<16x128xf32, #tpu.memory_space<vmem>>, vector<8x16xf32>
    tpu.vector_store %arg6[%c0_3, %c0_4], %2 {strides = array<i32>} : memref<16x128xf32, #tpu.memory_space<vmem>>, vector<8x16xf32>,
    %c0_5 = arith.constant 0 : index
    %c0_6 = arith.constant 0 : index
    %4 = vector.load %arg6[%c0_5, %c0_6] : memref<16x128xf32, #tpu.memory_space<vmem>>, vector<16x128xf32>
    %5 = tpu.iota {dimensions = array<i32: 0>} : vector<16x1xi32>
    %c8_i32 = arith.constant 8 : i32
    %6 = vector.broadcast %c8_i32 : i32 to vector<16x1xi32>
    %7 = arith.cmpi slt, %5, %6 : vector<16x1xi32>
    %8 = arith.extui %7 : vector<16x1xi1> to vector<16x1xi32>
    %9 = arith.sitofp %8 : vector<16x1xi32> to vector<16x1xf32>
    %10 = arith.truncf %4 : vector<16x128xf32> to vector<16x128xbf16>
    %c0_7 = arith.constant 0 : index
    %c0_8 = arith.constant 0 : index
    %11 = vector.load %arg1[%c0_7, %c0_8] : memref<128x128xbf16, #tpu.memory_space<vmem>>, vector<128x128xbf16>
    %c0_9 = arith.constant 0 : index
    %c0_10 = arith.constant 0 : index
    %12 = vector.load %arg4[%c0_9, %c0_10] : memref<8x128xf32, #tpu.memory_space<vmem>>, vector<1x128xf32>
    %c1 = arith.constant 1 : index
    %c0_11 = arith.constant 0 : index
    %13 = vector.load %arg4[%c1, %c0_11] : memref<8x128xf32, #tpu.memory_space<vmem>>, vector<1x128xf32>
    %cst_12 = arith.constant dense<0.000000e+00> : vector<16x128xf32>
    %14 = tpu.matmul %10, %11, %cst_12 {dimension_numbers = #tpu.dot_dimension_numbers<[1], [0], [0], [1], [0, 0, 1, 1], [], []>} : vector<16x128xbf16>, vector<128x128xbf16>, vector<16x128xf32> -> vector<16x128xf32>
    %cst_13 = arith.constant dense<0.000000e+00> : vector<128xf32>
    %15 = vector.multi_reduction <add>, %14, %cst_13 [0] : vector<16x128xf32> to vector<128xf32>
    %16 = vector.shape_cast %15 : vector<128xf32> to vector<1x128xf32>
    %17 = arith.mulf %14, %14 : vector<16x128xf32>
    %cst_14 = arith.constant dense<0.000000e+00> : vector<128xf32>
    %18 = vector.multi_reduction <add>, %17, %cst_14 [0] : vector<16x128xf32> to vector<128xf32>
    %19 = vector.shape_cast %18 : vector<128xf32> to vector<1x128xf32>
    %cst_15 = arith.constant 1.250000e-01 : f32
    %20 = vector.broadcast %cst_15 : f32 to vector<1x128xf32>
    %21 = arith.mulf %16, %20 : vector<1x128xf32>
    %cst_16 = arith.constant 1.250000e-01 : f32
    %22 = vector.broadcast %cst_16 : f32 to vector<1x128xf32>
    %23 = arith.mulf %19, %22 : vector<1x128xf32>
    %24 = arith.mulf %21, %21 : vector<1x128xf32>
    %25 = arith.subf %23, %24 : vector<1x128xf32>
    %cst_17 = arith.constant 9.99999974E-6 : f32
    %26 = vector.broadcast %cst_17 : f32 to vector<1x128xf32>
    %27 = arith.addf %25, %26 : vector<1x128xf32>
    %28 = math.rsqrt %27 : vector<1x128xf32>
    %29 = arith.mulf %12, %28 : vector<1x128xf32>
    %30 = arith.mulf %21, %29 : vector<1x128xf32>
    %31 = arith.subf %13, %30 : vector<1x128xf32>
    %32 = vector.broadcast %29 : vector<1x128xf32> to vector<16x128xf32>
    %33 = arith.mulf %14, %32 : vector<16x128xf32>
    %34 = vector.broadcast %31 : vector<1x128xf32> to vector<16x128xf32>
    %35 = arith.addf %33, %34 : vector<16x128xf32>
    %cst_18 = arith.constant 0.000000e+00 : f32
    %36 = vector.broadcast %cst_18 : f32 to vector<16x128xf32>
    %37 = arith.maximumf %35, %36 : vector<16x128xf32>
    %38 = vector.broadcast %9 : vector<16x1xf32> to vector<16x128xf32>
    %39 = arith.mulf %37, %38 : vector<16x128xf32>
    %40 = arith.truncf %39 : vector<16x128xf32> to vector<16x128xbf16>
    %c0_19 = arith.constant 0 : index
    %c0_20 = arith.constant 0 : index
    %c0_21 = arith.constant 0 : index
    %41 = vector.load %arg2[%c0_19, %c0_20, %c0_21] : memref<2x128x128xbf16, #tpu.memory_space<vmem>>, vector<1x128x128xbf16>
    %42 = vector.shape_cast %41 : vector<1x128x128xbf16> to vector<128x128xbf16>
    %c2 = arith.constant 2 : index
    %c0_22 = arith.constant 0 : index
    %43 = vector.load %arg4[%c2, %c0_22] : memref<8x128xf32, #tpu.memory_space<vmem>>, vector<1x128xf32>
    %c3 = arith.constant 3 : index
    %c0_23 = arith.constant 0 : index
    %44 = vector.load %arg4[%c3, %c0_23] : memref<8x128xf32, #tpu.memory_space<vmem>>, vector<1x128xf32>
    %cst_24 = arith.constant dense<0.000000e+00> : vector<16x128xf32>
    %45 = tpu.matmul %40, %42, %cst_24 {dimension_numbers = #tpu.dot_dimension_numbers<[1], [0], [0], [1], [0, 0, 1, 1], [], []>} : vector<16x128xbf16>, vector<128x128xbf16>, vector<16x128xf32> -> vector<16x128xf32>
    %cst_25 = arith.constant dense<0.000000e+00> : vector<128xf32>
    %46 = vector.multi_reduction <add>, %45, %cst_25 [0] : vector<16x128xf32> to vector<128xf32>
    %47 = vector.shape_cast %46 : vector<128xf32> to vector<1x128xf32>
    %48 = arith.mulf %45, %45 : vector<16x128xf32>
    %cst_26 = arith.constant dense<0.000000e+00> : vector<128xf32>
    %49 = vector.multi_reduction <add>, %48, %cst_26 [0] : vector<16x128xf32> to vector<128xf32>
    %50 = vector.shape_cast %49 : vector<128xf32> to vector<1x128xf32>
    %cst_27 = arith.constant 1.250000e-01 : f32
    %51 = vector.broadcast %cst_27 : f32 to vector<1x128xf32>
    %52 = arith.mulf %47, %51 : vector<1x128xf32>
    %cst_28 = arith.constant 1.250000e-01 : f32
    %53 = vector.broadcast %cst_28 : f32 to vector<1x128xf32>
    %54 = arith.mulf %50, %53 : vector<1x128xf32>
    %55 = arith.mulf %52, %52 : vector<1x128xf32>
    %56 = arith.subf %54, %55 : vector<1x128xf32>
    %cst_29 = arith.constant 9.99999974E-6 : f32
    %57 = vector.broadcast %cst_29 : f32 to vector<1x128xf32>
    %58 = arith.addf %56, %57 : vector<1x128xf32>
    %59 = math.rsqrt %58 : vector<1x128xf32>
    %60 = arith.mulf %43, %59 : vector<1x128xf32>
    %61 = arith.mulf %52, %60 : vector<1x128xf32>
    %62 = arith.subf %44, %61 : vector<1x128xf32>
    %63 = vector.broadcast %60 : vector<1x128xf32> to vector<16x128xf32>
    %64 = arith.mulf %45, %63 : vector<16x128xf32>
    %65 = vector.broadcast %62 : vector<1x128xf32> to vector<16x128xf32>
    %66 = arith.addf %64, %65 : vector<16x128xf32>
    %cst_30 = arith.constant 0.000000e+00 : f32
    %67 = vector.broadcast %cst_30 : f32 to vector<16x128xf32>
    %68 = arith.maximumf %66, %67 : vector<16x128xf32>
    %69 = vector.broadcast %9 : vector<16x1xf32> to vector<16x128xf32>
    %70 = arith.mulf %68, %69 : vector<16x128xf32>
    %71 = arith.truncf %70 : vector<16x128xf32> to vector<16x128xbf16>
    %c1_31 = arith.constant 1 : index
    %c0_32 = arith.constant 0 : index
    %c0_33 = arith.constant 0 : index
    %72 = vector.load %arg2[%c1_31, %c0_32, %c0_33] : memref<2x128x128xbf16, #tpu.memory_space<vmem>>, vector<1x128x128xbf16>
    %73 = vector.shape_cast %72 : vector<1x128x128xbf16> to vector<128x128xbf16>
    %c4 = arith.constant 4 : index
    %c0_34 = arith.constant 0 : index
    %74 = vector.load %arg4[%c4, %c0_34] : memref<8x128xf32, #tpu.memory_space<vmem>>, vector<1x128xf32>
    %c5 = arith.constant 5 : index
    %c0_35 = arith.constant 0 : index
    %75 = vector.load %arg4[%c5, %c0_35] : memref<8x128xf32, #tpu.memory_space<vmem>>, vector<1x128xf32>
    %cst_36 = arith.constant dense<0.000000e+00> : vector<16x128xf32>
    %76 = tpu.matmul %71, %73, %cst_36 {dimension_numbers = #tpu.dot_dimension_numbers<[1], [0], [0], [1], [0, 0, 1, 1], [], []>} : vector<16x128xbf16>, vector<128x128xbf16>, vector<16x128xf32> -> vector<16x128xf32>
    %cst_37 = arith.constant dense<0.000000e+00> : vector<128xf32>
    %77 = vector.multi_reduction <add>, %76, %cst_37 [0] : vector<16x128xf32> to vector<128xf32>
    %78 = vector.shape_cast %77 : vector<128xf32> to vector<1x128xf32>
    %79 = arith.mulf %76, %76 : vector<16x128xf32>
    %cst_38 = arith.constant dense<0.000000e+00> : vector<128xf32>
    %80 = vector.multi_reduction <add>, %79, %cst_38 [0] : vector<16x128xf32> to vector<128xf32>
    %81 = vector.shape_cast %80 : vector<128xf32> to vector<1x128xf32>
    %cst_39 = arith.constant 1.250000e-01 : f32
    %82 = vector.broadcast %cst_39 : f32 to vector<1x128xf32>
    %83 = arith.mulf %78, %82 : vector<1x128xf32>
    %cst_40 = arith.constant 1.250000e-01 : f32
    %84 = vector.broadcast %cst_40 : f32 to vector<1x128xf32>
    %85 = arith.mulf %81, %84 : vector<1x128xf32>
    %86 = arith.mulf %83, %83 : vector<1x128xf32>
    %87 = arith.subf %85, %86 : vector<1x128xf32>
    %cst_41 = arith.constant 9.99999974E-6 : f32
    %88 = vector.broadcast %cst_41 : f32 to vector<1x128xf32>
    %89 = arith.addf %87, %88 : vector<1x128xf32>
    %90 = math.rsqrt %89 : vector<1x128xf32>
    %91 = arith.mulf %74, %90 : vector<1x128xf32>
    %92 = arith.mulf %83, %91 : vector<1x128xf32>
    %93 = arith.subf %75, %92 : vector<1x128xf32>
    %94 = vector.broadcast %91 : vector<1x128xf32> to vector<16x128xf32>
    %95 = arith.mulf %76, %94 : vector<16x128xf32>
    %96 = vector.broadcast %93 : vector<1x128xf32> to vector<16x128xf32>
    %97 = arith.addf %95, %96 : vector<16x128xf32>
    %cst_42 = arith.constant 0.000000e+00 : f32
    %98 = vector.broadcast %cst_42 : f32 to vector<16x128xf32>
    %99 = arith.maximumf %97, %98 : vector<16x128xf32>
    %100 = vector.broadcast %9 : vector<16x1xf32> to vector<16x128xf32>
    %101 = arith.mulf %99, %100 : vector<16x128xf32>
    %102 = arith.truncf %101 : vector<16x128xf32> to vector<16x128xbf16>
    %c0_43 = arith.constant 0 : index
    %c0_44 = arith.constant 0 : index
    %103 = vector.load %arg3[%c0_43, %c0_44] : memref<128x128xbf16, #tpu.memory_space<vmem>>, vector<128x128xbf16>
    %cst_45 = arith.constant dense<0.000000e+00> : vector<16x128xf32>
    %104 = tpu.matmul %102, %103, %cst_45 {dimension_numbers = #tpu.dot_dimension_numbers<[1], [0], [0], [1], [0, 0, 1, 1], [], []>} : vector<16x128xbf16>, vector<128x128xbf16>, vector<16x128xf32> -> vector<16x128xf32>
    %c6 = arith.constant 6 : index
    %c0_46 = arith.constant 0 : index
    %105 = vector.load %arg4[%c6, %c0_46] : memref<8x128xf32, #tpu.memory_space<vmem>>, vector<1x128xf32>
    %106 = vector.broadcast %105 : vector<1x128xf32> to vector<16x128xf32>
    %107 = arith.addf %104, %106 : vector<16x128xf32>
    %c0_47 = arith.constant 0 : index
    %c0_48 = arith.constant 0 : index
    %108 = vector.load %arg5[%c0_47, %c0_48] : memref<16x128xf32, #tpu.memory_space<vmem>>, vector<16x128xf32>
    tpu.vector_store %arg5[%c0_47, %c0_48], %107 {strides = array<i32>} : memref<16x128xf32, #tpu.memory_space<vmem>>, vector<16x128xf32>,
    return
  }
}

</mosaic_0001>

<bundles_post_ra>
// kernel: generator_forward.1
= control target key start
LH: loop header
LB: loop body
LE: loop exit
PB: predicated region body
PF: predicated region fallthrough
CT: control target
= control target key end

     0   :  { %10 = vsyncpa [#allocation4], 0  ;;  %s1119_s0 = inlined_call_operand.hbm [shape: f32[8,16], index: 0, kind: input, shape index: {}]   ;;  %s1120_s1 = inlined_call_operand.hbm [shape: bf16[128,128], index: 1, kind: input, shape index: {}]   ;;  %s1121_s2 = inlined_call_operand.hbm [shape: bf16[2,128,128], index: 2, kind: input, shape index: {}]   ;;  %s1122_s3 = inlined_call_operand.hbm [shape: bf16[128,128], index: 3, kind: input, shape index: {}]   ;;  %s1123_s4 = inlined_call_operand.vmem [shape: f32[8,128], index: 4, kind: input, shape index: {}]   ;;  %s1124_s5 = inlined_call_operand.vmem [shape: f32[16,128], index: 5, kind: output, shape index: {}]  }
   0x1   :  { %11 = vsyncpa [#allocation6], 0 }
   0x2   :  { %12 = vsyncpa [#allocation9], 0  ;;  %s947_s18 = smov [#allocation5]   ;;  %s853_s22 = scalar_lea.hbm %s1120_s1, 1024 }
   0x3   :  { %s28_s19 = sshll.u32 %s947_s18, 4  ;;  %p854_p0 = scmp.ne.s32.totalorder %s1120_s1, %s853_s22  ;;  %s29_s19 = int_to_ptr.vmem [resolvable:$true] %s28_s19 }
   0x4   :  { %p857_p1 = scmp.lt.u32.totalorder %s853_s22, %s1120_s1 }
   0x6   :  { %p859_p2 = pnand %p857_p1, %p854_p0 }
   0x8   :  { %862 = shalt.err (!%p859_p2)
}
   0x9   :  { %s863_s27 = scalar_lea.vmem %s29_s19, 1024  ;;  %p868_p4 = scmp.lt.s32.totalorder %s29_s19, %s29_s19 }
   0xa   :  { %p864_p3 = scmp.ne.s32.totalorder %s29_s19, %s863_s27  ;;  %p869_p5 = scmp.lt.s32.totalorder %s863_s27, %s863_s27 }
   0xc   :  { %p870_p6 = por %p869_p5, %p868_p4 }
   0xe   :  { %p871_p7 = pnand %p870_p6, %p864_p3 }
  0x10   :  { %874 = shalt.err (!%p871_p7)
}
  0x11   :  { %s948_s28 = smov 64   ;;  %s949_s29 = smov 4  }
  0x12   :  { %34 = dma.hbm_to_vmem [thread:$0]  %s1120_s1, 1024, %s29_s19, [#allocation6], %s948_s28, %s948_s28, %s949_s29  }
  0x13   :  { %s950_s7 = smov [#allocation3]   ;;  %s951_s9 = smov [#allocation7]  }
  0x14   :  { %s19_s8 = sshll.u32 %s950_s7, 4  ;;  %s40_s10 = sshll.u32 %s951_s9, 4  ;;  %s20_s8 = int_to_ptr.vmem [resolvable:$true] %s19_s8  ;;  %s41_s10 = int_to_ptr.vmem [resolvable:$true] %s40_s10 }
  0x15   :  { %s875_s13 = scalar_lea.hbm %s1119_s0, 128 }
  0x16   :  { %p876_p8 = scmp.ne.s32.totalorder %s1119_s0, %s875_s13  ;;  %p879_p9 = scmp.lt.u32.totalorder %s875_s13, %s1119_s0 }
  0x18   :  { %p881_p10 = pnand %p879_p9, %p876_p8 }
  0x1a   :  { %884 = shalt.err (!%p881_p10)
}
  0x1b   :  { %s885_s1 = scalar_lea.vmem %s20_s8, 128  ;;  %p890_p12 = scmp.lt.s32.totalorder %s20_s8, %s20_s8 }
  0x1c   :  { %p886_p11 = scmp.ne.s32.totalorder %s20_s8, %s885_s1  ;;  %p891_p13 = scmp.lt.s32.totalorder %s885_s1, %s885_s1 }
  0x1e   :  { %p892_p0 = por %p891_p13, %p890_p12 }
  0x20   :  { %p893_p1 = pnand %p892_p0, %p886_p11 }
  0x22   :  { %896 = shalt.err (!%p893_p1)
}
  0x23   :  { %22 = dma.hbm_to_vmem [thread:$0]  %s1119_s0, 128, %s20_s8, [#allocation4]  }
  0x24   :  { %s897_s22 = scalar_lea.hbm %s1121_s2, 2048 }
  0x25   :  { %p898_p2 = scmp.ne.s32.totalorder %s1121_s2, %s897_s22  ;;  %p901_p3 = scmp.lt.u32.totalorder %s897_s22, %s1121_s2 }
  0x27   :  { %p903_p4 = pnand %p901_p3, %p898_p2 }
  0x29   :  { %906 = shalt.err (!%p903_p4)
}
  0x2a   :  { %s907_s27 = scalar_lea.vmem %s41_s10, 2048  ;;  %p912_p6 = scmp.lt.s32.totalorder %s41_s10, %s41_s10 }
  0x2b   :  { %p908_p5 = scmp.ne.s32.totalorder %s41_s10, %s907_s27  ;;  %p913_p7 = scmp.lt.s32.totalorder %s907_s27, %s907_s27 }
  0x2d   :  { %p914_p8 = por %p913_p7, %p912_p6 }
  0x2f   :  { %p915_p9 = pnand %p914_p8, %p908_p5 }
  0x31   :  { %918 = shalt.err (!%p915_p9)
}
  0x32   :  { %46 = dma.hbm_to_vmem [thread:$0]  %s1121_s2, 2048, %s41_s10, [#allocation6], %s948_s28, %s948_s28, %s949_s29  }
  0x33   :  { %s952_s6 = smov [#allocation8]   ;;  %s919_s11 = scalar_lea.hbm %s1122_s3, 1024 }
  0x34   :  { %s52_s7 = sshll.u32 %s952_s6, 4  ;;  %p920_p10 = scmp.ne.s32.totalorder %s1122_s3, %s919_s11  ;;  %s53_s7 = int_to_ptr.vmem [resolvable:$true] %s52_s7 }
  0x35   :  { %p923_p11 = scmp.lt.u32.totalorder %s919_s11, %s1122_s3 }
  0x37   :  { %p925_p12 = pnand %p923_p11, %p920_p10 }
  0x39   :  { %928 = shalt.err (!%p925_p12)
}
  0x3a   :  { %s929_s16 = scalar_lea.vmem %s53_s7, 1024  ;;  %p934_p0 = scmp.lt.s32.totalorder %s53_s7, %s53_s7 }
  0x3b   :  { %p930_p13 = scmp.ne.s32.totalorder %s53_s7, %s929_s16  ;;  %p935_p1 = scmp.lt.s32.totalorder %s929_s16, %s929_s16 }
  0x3d   :  { %p936_p2 = por %p935_p1, %p934_p0 }
  0x3f   :  { %p937_p3 = pnand %p936_p2, %p930_p13 }
  0x41   :  { %940 = shalt.err (!%p937_p3)
}
  0x42   :  { %58 = dma.hbm_to_vmem [thread:$0]  %s1122_s3, 1024, %s53_s7, [#allocation9], %s948_s28, %s948_s28, %s949_s29  }
  0x43   :  { %941 = dma.done.wait [#allocation4], 128  }
  0x44   :  { %942 = vsyncadd [#allocation4], 4294967168 }
  0x45   :  { %943 = dma.done.wait [#allocation6], 3072  }
  0x46   :  { %944 = vsyncadd [#allocation6], 4294964224 }
  0x47   :  { %945 = dma.done.wait [#allocation9], 1024  }
  0x48   :  { %946 = vsyncadd [#allocation9], 4294966272  ;;  %v953_v0 = vmov 0.0   ;;  %vm954_vm0 = vmmov 0   ;;  %v815_v1 = vld [vmem:[#allocation5] sm:$0xff]   ;;  %v816_v2 = vld [vmem:[#allocation5 + $0x8] sm:$0xff]   ;;  %v223_v45 = vlaneseq }
  0x49   :  { %727 = vmatprep.subr.bf16.mxu0 %v953_v0  ;;  %74 = vst [vmem:[#allocation2] sm:$0xff] %v953_v0  ;;  %743 = vmatprep.mubr.msk.bf16.mxu0 %vm954_vm0, %v953_v0  ;;  %v817_v3 = vld [vmem:[#allocation5 + $0x10] sm:$0xff]   ;;  %vm77_vm1 = vcmask 130048   ;;  %v818_v4 = vld [vmem:[#allocation5 + $0x18] sm:$0xff]   ;;  %v819_v6 = vld [vmem:[#allocation5 + $0x20] sm:$0xff]  }
  0x4a   :  { %747 = vmatprep.subr.bf16.mxu1 %v953_v0  ;;  %763 = vmatprep.mubr.msk.bf16.mxu1 %vm954_vm0, %v953_v0  ;;  %v76_v5 = vld [vmem:[#allocation3] sm:$0xff]  ;;  %v820_v7 = vld [vmem:[#allocation5 + $0x28] sm:$0xff]   ;;  %v821_v8 = vld [vmem:[#allocation5 + $0x30] sm:$0xff]   ;;  %v224_v46 = vshrl.u32 %v223_v45, 7 }
  0x4b   :  { %728 = vmatpush3.bf16.msra.mxu0 %v815_v1  ;;  %78 = vst.msk [vmem:[#allocation2] sm:$0xff] %vm77_vm1, %v76_v5  ;;  %v822_v9 = vld [vmem:[#allocation5 + $0x38] sm:$0xff]   ;;  %v823_v12 = vld [vmem:[#allocation7] sm:$0xff]   ;;  %v824_v13 = vld [vmem:[#allocation7 + $0x8] sm:$0xff]  }
  0x4c   :  { %729 = vmatprep.subr.bf16.mxu0 %v953_v0  ;;  %748 = vmatpush3.bf16.msra.mxu1 %v823_v12  ;;  %v825_v14 = vld [vmem:[#allocation7 + $0x10] sm:$0xff]   ;;  %v826_v15 = vld [vmem:[#allocation7 + $0x18] sm:$0xff]   ;;  %v827_v16 = vld [vmem:[#allocation7 + $0x20] sm:$0xff]   ;;  %v1071_v48 = vsub.s32 0, %v224_v46 }
  0x4d   :  { %749 = vmatprep.subr.bf16.mxu1 %v953_v0  ;;  %v828_v17 = vld [vmem:[#allocation7 + $0x28] sm:$0xff]   ;;  %v829_v18 = vld [vmem:[#allocation7 + $0x30] sm:$0xff]   ;;  %v830_v19 = vld [vmem:[#allocation7 + $0x38] sm:$0xff]  }
  0x4e   :  { %v107_v47 = vld [vmem:[%s1123_s4] sm:$0x1]  ;;  %v108_v51 = vld [vmem:[%s1123_s4 + $0x1] sm:$0x1]  ;;  %v831_v1 = vld [vmem:[#allocation7 + $0x40] sm:$0xff]  }
  0x4f   :  { %730 = vmatpush3.bf16.msra.mxu0 %v816_v2  ;;  %v832_v2 = vld [vmem:[#allocation7 + $0x48] sm:$0xff]   ;;  %v835_v5 = vld [vmem:[#allocation7 + $0x60] sm:$0xff]  }
  0x50   :  { %731 = vmatprep.subr.bf16.mxu0 %v953_v0  ;;  %750 = vmatpush3.bf16.msra.mxu1 %v824_v13 }
  0x51   :  { %751 = vmatprep.subr.bf16.mxu1 %v953_v0 }
  0x52   :  { %v79_v10 = vld [vmem:[#allocation2] sm:$0xff] }
  0x53   :  { %732 = vmatpush3.bf16.msra.mxu0 %v817_v3  ;;  %v90_v11 = vpack.c.bf16 %v953_v0, %v79_v10  ;;  %v833_v3 = vld [vmem:[#allocation7 + $0x50] sm:$0xff]  }
  0x54   :  { %733 = vmatprep.subr.bf16.mxu0 %v953_v0  ;;  %752 = vmatpush3.bf16.msra.mxu1 %v825_v14 }
  0x55   :  { %753 = vmatprep.subr.bf16.mxu1 %v953_v0 }
  0x57   :  { %734 = vmatpush3.bf16.msra.mxu0 %v818_v4  ;;  %v834_v4 = vld [vmem:[#allocation7 + $0x58] sm:$0xff]  }
  0x58   :  { %735 = vmatprep.subr.bf16.mxu0 %v953_v0  ;;  %754 = vmatpush3.bf16.msra.mxu1 %v826_v15 }
  0x59   :  { %755 = vmatprep.subr.bf16.mxu1 %v953_v0 }
  0x5b   :  { %736 = vmatpush3.bf16.msra.mxu0 %v819_v6  ;;  %v836_v6 = vld [vmem:[#allocation7 + $0x68] sm:$0xff]  }
  0x5c   :  { %737 = vmatprep.subr.bf16.mxu0 %v953_v0  ;;  %756 = vmatpush3.bf16.msra.mxu1 %v827_v16 }
  0x5d   :  { %757 = vmatprep.subr.bf16.mxu1 %v953_v0 }
  0x5f   :  { %738 = vmatpush3.bf16.msra.mxu0 %v820_v7  ;;  %v837_v7 = vld [vmem:[#allocation7 + $0x70] sm:$0xff]  }
  0x60   :  { %739 = vmatprep.subr.bf16.mxu0 %v953_v0  ;;  %758 = vmatpush3.bf16.msra.mxu1 %v828_v17 }
  0x61   :  { %759 = vmatprep.subr.bf16.mxu1 %v953_v0 }
  0x63   :  { %740 = vmatpush3.bf16.msra.mxu0 %v821_v8  ;;  %v838_v8 = vld [vmem:[#allocation7 + $0x78] sm:$0xff]  }
  0x64   :  { %741 = vmatprep.subr.bf16.mxu0 %v953_v0  ;;  %760 = vmatpush3.bf16.msra.mxu1 %v829_v18 }
  0x65   :  { %761 = vmatprep.subr.bf16.mxu1 %v953_v0 }
  0x67   :  { %742 = vmatpush3.bf16.msra.mxu0 %v822_v9 }
  0x68   :  { %767 = vmatprep.subr.bf16.mxu0 %v953_v0  ;;  %762 = vmatpush3.bf16.msra.mxu1 %v830_v19 }
  0x69   :  { %787 = vmatprep.subr.bf16.mxu1 %v953_v0 }
  0x6a   :  { %744 = vmatmul.mubr.bf16.vlgmr.msra.gmra.mrb[0].mxu0 %v90_v11 }
  0x6b   :  { %783 = vmatprep.mubr.msk.bf16.mxu0 %vm954_vm0, %v953_v0  ;;  %768 = vmatpush3.bf16.msra.mxu0 %v831_v1 }
  0x6c   :  { %769 = vmatprep.subr.bf16.mxu0 %v953_v0 }
  0x6f   :  { %770 = vmatpush3.bf16.msra.mxu0 %v832_v2 }
  0x70   :  { %771 = vmatprep.subr.bf16.mxu0 %v953_v0 }
  0x73   :  { %772 = vmatpush3.bf16.msra.mxu0 %v833_v3 }
  0x74   :  { %773 = vmatprep.subr.bf16.mxu0 %v953_v0 }
  0x77   :  { %774 = vmatpush3.bf16.msra.mxu0 %v834_v4 }
  0x78   :  { %775 = vmatprep.subr.bf16.mxu0 %v953_v0 }
  0x7b   :  { %776 = vmatpush3.bf16.msra.mxu0 %v835_v5 }
  0x7c   :  { %777 = vmatprep.subr.bf16.mxu0 %v953_v0 }
  0x7f   :  { %778 = vmatpush3.bf16.msra.mxu0 %v836_v6 }
  0x80   :  { %779 = vmatprep.subr.bf16.mxu0 %v953_v0 }
  0x83   :  { %780 = vmatpush3.bf16.msra.mxu0 %v837_v7 }
  0x84   :  { %781 = vmatprep.subr.bf16.mxu0 %v953_v0 }
  0x87   :  { %782 = vmatpush3.bf16.msra.mxu0 %v838_v8 }
 0x13d   :  { %v191_v20 = vpop.f32.mrb[0].mxu0 }
 0x13e   :  { %v745_v21 = vpop.f32.mrb[1].mxu0  ;;  %v205_v23 = vmul.f32 %v191_v20, %v191_v20 }
 0x13f   :  { %v194_v22 = vpop.f32.mrb[2].mxu0 }
 0x140   :  { %v198_v24 = vadd.f32 %v194_v22, %v191_v20  ;;  %v206_v25 = vmul.f32 %v194_v22, %v194_v22  ;;  %v746_v26 = vpop.f32.mrb[3].mxu0 }
 0x142   :  { %v199_v27 = vrot.slane %v198_v24, 4  ;;  %v207_v28 = vadd.f32 %v206_v25, %v205_v23 }
 0x144   :  { %v200_v29 = vadd.f32 %v199_v27, %v198_v24  ;;  %v208_v30 = vrot.slane %v207_v28, 4 }
 0x146   :  { %v201_v31 = vrot.slane %v200_v29, 2  ;;  %v209_v32 = vadd.f32 %v208_v30, %v207_v28 }
 0x148   :  { %v202_v33 = vadd.f32 %v201_v31, %v200_v29  ;;  %v210_v34 = vrot.slane %v209_v32, 2 }
 0x14a   :  { %v203_v35 = vrot.slane %v202_v33, 1  ;;  %v211_v36 = vadd.f32 %v210_v34, %v209_v32  ;;  %v256_v34 = vld [vmem:[%s1123_s4 + $0x2] sm:$0x1] }
 0x14c   :  { %v204_v37 = vadd.f32 %v203_v35, %v202_v33  ;;  %v212_v38 = vrot.slane %v211_v36, 1 }
 0x14e   :  { %v213_v39 = vadd.f32 %v212_v38, %v211_v36  ;;  %v214_v40 = vmul.f32 0.125, %v204_v37  ;;  %v257_v37 = vld [vmem:[%s1123_s4 + $0x3] sm:$0x1] }
 0x150   :  { %v215_v41 = vmul.f32 0.125, %v213_v39  ;;  %v216_v42 = vmul.f32 %v214_v40, %v214_v40 }
 0x152   :  { %v217_v43 = vsub.f32 %v215_v41, %v216_v42 }
 0x154   :  { %v218_v44 = vadd.f32 1e-05, %v217_v43 }
 0x156   :  { %847 = vrsqrt.f32 %v218_v44 }
 0x160   :  { %v848_v49 = vpop.eup %847 }
 0x161   :  { %v220_v50 = vmul.f32 %v848_v49, %v107_v47 }
 0x163   :  { %v221_v52 = vmul.f32 %v220_v50, %v214_v40  ;;  %v226_v53 = vrot.slane %v220_v50, %v1071_v48 }
 0x165   :  { %v222_v54 = vsub.f32 %v108_v51, %v221_v52  ;;  %v227_v55 = vmul.f32 %v226_v53, %v191_v20  ;;  %v228_v56 = vmul.f32 %v226_v53, %v194_v22  ;;  %v839_v51 = vld [vmem:[#allocation8] sm:$0xff]   ;;  %v840_v52 = vld [vmem:[#allocation8 + $0x8] sm:$0xff]   ;;  %v841_v53 = vld [vmem:[#allocation8 + $0x10] sm:$0xff]  }
 0x167   :  { %v232_v57 = vrot.slane %v222_v54, %v1071_v48  ;;  %v842_v54 = vld [vmem:[#allocation8 + $0x18] sm:$0xff]  }
 0x169   :  { %v234_v58 = vadd.f32 %v232_v57, %v228_v56  ;;  %v233_v59 = vadd.f32 %v232_v57, %v227_v55  ;;  %v843_v55 = vld [vmem:[#allocation8 + $0x20] sm:$0xff]   ;;  %v844_v56 = vld [vmem:[#allocation8 + $0x28] sm:$0xff]   ;;  %v845_v57 = vld [vmem:[#allocation8 + $0x30] sm:$0xff]  }
 0x16b   :  { %v236_v60 = vmax.f32 %v234_v58, 0.0  ;;  %v235_v61 = vmax.f32 %v233_v59, 0.0  ;;  %v846_v58 = vld [vmem:[#allocation8 + $0x38] sm:$0xff]  }
 0x16d   :  { %v238_v62 = vmul.f32 0.0, %v236_v60 }
 0x16f   :  { %v239_v63 = vpack.c.bf16 %v238_v62, %v235_v61 }
 0x171   :  { %764 = vmatmul.mubr.bf16.vlgmr.msra.gmra.mrb[0].mxu1 %v239_v63 }
 0x172   :  { %803 = vmatprep.mubr.msk.bf16.mxu1 %vm954_vm0, %v953_v0  ;;  %788 = vmatpush3.bf16.msra.mxu1 %v839_v51 }
 0x173   :  { %789 = vmatprep.subr.bf16.mxu1 %v953_v0 }
 0x176   :  { %790 = vmatpush3.bf16.msra.mxu1 %v840_v52 }
 0x177   :  { %791 = vmatprep.subr.bf16.mxu1 %v953_v0 }
 0x17a   :  { %792 = vmatpush3.bf16.msra.mxu1 %v841_v53 }
 0x17b   :  { %793 = vmatprep.subr.bf16.mxu1 %v953_v0 }
 0x17e   :  { %794 = vmatpush3.bf16.msra.mxu1 %v842_v54 }
 0x17f   :  { %795 = vmatprep.subr.bf16.mxu1 %v953_v0 }
 0x182   :  { %796 = vmatpush3.bf16.msra.mxu1 %v843_v55 }
 0x183   :  { %797 = vmatprep.subr.bf16.mxu1 %v953_v0 }
 0x186   :  { %798 = vmatpush3.bf16.msra.mxu1 %v844_v56 }
 0x187   :  { %799 = vmatprep.subr.bf16.mxu1 %v953_v0 }
 0x18a   :  { %800 = vmatpush3.bf16.msra.mxu1 %v845_v57 }
 0x18b   :  { %801 = vmatprep.subr.bf16.mxu1 %v953_v0 }
 0x18e   :  { %802 = vmatpush3.bf16.msra.mxu1 %v846_v58 }
 0x244   :  { %v340_v9 = vpop.f32.mrb[0].mxu1 }
 0x245   :  { %v765_v10 = vpop.f32.mrb[1].mxu1  ;;  %v354_v12 = vmul.f32 %v340_v9, %v340_v9 }
 0x246   :  { %v343_v11 = vpop.f32.mrb[2].mxu1 }
 0x247   :  { %v347_v13 = vadd.f32 %v343_v11, %v340_v9  ;;  %v355_v14 = vmul.f32 %v343_v11, %v343_v11  ;;  %v766_v15 = vpop.f32.mrb[3].mxu1 }
 0x249   :  { %v348_v16 = vrot.slane %v347_v13, 4  ;;  %v356_v17 = vadd.f32 %v355_v14, %v354_v12 }
 0x24b   :  { %v349_v18 = vadd.f32 %v348_v16, %v347_v13  ;;  %v357_v19 = vrot.slane %v356_v17, 4 }
 0x24d   :  { %v350_v20 = vrot.slane %v349_v18, 2  ;;  %v358_v21 = vadd.f32 %v357_v19, %v356_v17 }
 0x24f   :  { %v351_v22 = vadd.f32 %v350_v20, %v349_v18  ;;  %v359_v23 = vrot.slane %v358_v21, 2  ;;  %v406_v20 = vld [vmem:[%s1123_s4 + $0x4] sm:$0x1] }
 0x251   :  { %v352_v24 = vrot.slane %v351_v22, 1  ;;  %v360_v25 = vadd.f32 %v359_v23, %v358_v21  ;;  %v407_v23 = vld [vmem:[%s1123_s4 + $0x5] sm:$0x1] }
 0x253   :  { %v353_v26 = vadd.f32 %v352_v24, %v351_v22  ;;  %v361_v27 = vrot.slane %v360_v25, 1 }
 0x255   :  { %v362_v28 = vadd.f32 %v361_v27, %v360_v25  ;;  %v363_v29 = vmul.f32 0.125, %v353_v26 }
 0x257   :  { %v364_v30 = vmul.f32 0.125, %v362_v28  ;;  %v365_v31 = vmul.f32 %v363_v29, %v363_v29 }
 0x259   :  { %v366_v32 = vsub.f32 %v364_v30, %v365_v31 }
 0x25b   :  { %v367_v33 = vadd.f32 1e-05, %v366_v32 }
 0x25d   :  { %849 = vrsqrt.f32 %v367_v33 }
 0x267   :  { %v850_v35 = vpop.eup %849 }
 0x268   :  { %v369_v36 = vmul.f32 %v850_v35, %v256_v34 }
 0x26a   :  { %v370_v38 = vmul.f32 %v369_v36, %v363_v29  ;;  %v375_v39 = vrot.slane %v369_v36, %v1071_v48  ;;  %v682_v36 = vld [vmem:[%s1123_s4 + $0x6] ss:$0 sm:$0xff] }
 0x26c   :  { %v371_v40 = vsub.f32 %v257_v37, %v370_v38  ;;  %v376_v41 = vmul.f32 %v375_v39, %v340_v9  ;;  %v377_v42 = vmul.f32 %v375_v39, %v343_v11 }
 0x26e   :  { %v381_v43 = vrot.slane %v371_v40, %v1071_v48 }
 0x270   :  { %v382_v44 = vadd.f32 %v381_v43, %v376_v41  ;;  %v383_v45 = vadd.f32 %v381_v43, %v377_v42 }
 0x272   :  { %v385_v46 = vmax.f32 %v383_v45, 0.0  ;;  %v384_v49 = vmax.f32 %v382_v44, 0.0 }
 0x274   :  { %v387_v47 = vmul.f32 0.0, %v385_v46 }
 0x276   :  { %v388_v50 = vpack.c.bf16 %v387_v47, %v384_v49 }
 0x278   :  { %784 = vmatmul.mubr.bf16.vlgmr.msra.gmra.mrb[4].mxu0 %v388_v50 }
 0x34b   :  { %v490_v59 = vpop.f32.mrb[4].mxu0 }
 0x34c   :  { %v785_v60 = vpop.f32.mrb[5].mxu0  ;;  %v504_v62 = vmul.f32 %v490_v59, %v490_v59 }
 0x34d   :  { %v493_v61 = vpop.f32.mrb[6].mxu0 }
 0x34e   :  { %v497_v63 = vadd.f32 %v493_v61, %v490_v59  ;;  %v505_v1 = vmul.f32 %v493_v61, %v493_v61  ;;  %v786_v2 = vpop.f32.mrb[7].mxu0 }
 0x350   :  { %v498_v3 = vrot.slane %v497_v63, 4  ;;  %v506_v4 = vadd.f32 %v505_v1, %v504_v62 }
 0x352   :  { %v499_v5 = vadd.f32 %v498_v3, %v497_v63  ;;  %v507_v6 = vrot.slane %v506_v4, 4 }
 0x354   :  { %v500_v7 = vrot.slane %v499_v5, 2  ;;  %v508_v8 = vadd.f32 %v507_v6, %v506_v4 }
 0x356   :  { %v501_v9 = vadd.f32 %v500_v7, %v499_v5  ;;  %v509_v10 = vrot.slane %v508_v8, 2 }
 0x358   :  { %v502_v11 = vrot.slane %v501_v9, 1  ;;  %v510_v12 = vadd.f32 %v509_v10, %v508_v8 }
 0x35a   :  { %v503_v0 = vadd.f32 %v502_v11, %v501_v9  ;;  %v511_v13 = vrot.slane %v510_v12, 1 }
 0x35c   :  { %v512_v14 = vadd.f32 %v511_v13, %v510_v12  ;;  %v513_v15 = vmul.f32 0.125, %v503_v0 }
 0x35e   :  { %v514_v16 = vmul.f32 0.125, %v512_v14  ;;  %v515_v17 = vmul.f32 %v513_v15, %v513_v15 }
 0x360   :  { %v516_v18 = vsub.f32 %v514_v16, %v515_v17 }
 0x362   :  { %v517_v19 = vadd.f32 1e-05, %v516_v18 }
 0x364   :  { %851 = vrsqrt.f32 %v517_v19 }
 0x36e   :  { %v852_v21 = vpop.eup %851 }
 0x36f   :  { %v519_v22 = vmul.f32 %v852_v21, %v406_v20 }
 0x371   :  { %v520_v24 = vmul.f32 %v519_v22, %v513_v15  ;;  %v525_v25 = vrot.slane %v519_v22, %v1071_v48 }
 0x373   :  { %v521_v26 = vsub.f32 %v407_v23, %v520_v24  ;;  %v526_v27 = vmul.f32 %v525_v25, %v490_v59  ;;  %v527_v28 = vmul.f32 %v525_v25, %v493_v61 }
 0x375   :  { %v531_v29 = vrot.slane %v521_v26, %v1071_v48 }
 0x377   :  { %v532_v30 = vadd.f32 %v531_v29, %v526_v27  ;;  %v533_v31 = vadd.f32 %v531_v29, %v527_v28 }
 0x379   :  { %v535_v32 = vmax.f32 %v533_v31, 0.0  ;;  %v534_v34 = vmax.f32 %v532_v30, 0.0 }
 0x37b   :  { %v537_v33 = vmul.f32 0.0, %v535_v32 }
 0x37d   :  { %v538_v35 = vpack.c.bf16 %v537_v33, %v534_v34 }
 0x37f   :  { %804 = vmatmul.mubr.bf16.vlgmr.msra.gmra.mrb[4].mxu1 %v538_v35 }
 0x452   :  { %v642_v37 = vpop.f32.mrb[4].mxu1 }
 0x453   :  { %v643_v38 = vadd.f32 %v682_v36, %v642_v37  ;;  %v805_v39 = vpop.f32.mrb[5].mxu1 }
 0x454   :  { %v645_v40 = vpop.f32.mrb[6].mxu1 }
 0x455   :  { %649 = vst [vmem:[%s1124_s5] sm:$0xff] %v643_v38  ;;  %v646_v48 = vadd.f32 %v682_v36, %v645_v40  ;;  %v806_v41 = vpop.f32.mrb[7].mxu1 }
 0x457   :  { %650 = vst [vmem:[%s1124_s5 + $0x8] sm:$0xff] %v646_v48 }
 0x458   :  { %655 = vsyncpa [#allocation4], 1 }
 0x459   :  { %656 = vsyncpa [#allocation6], 1 }
 0x45a   :  { %657 = vsyncpa [#allocation9], 1 }

</bundles_post_ra>
